<compile_context>
chip_gen: v7x
topology: tpu7x:2x2x1
jax: 0.10.0
libtpu: 0.0.40
codegen_flags: <defaults>
</compile_context>

<pallas_src>
import functools

import jax
import jax.numpy as jnp
from jax import lax
from jax.experimental import pallas as pl
from jax.experimental.pallas import tpu as pltpu

# config.attention_temperature is not defined in the source snippet; pick a
# deterministic positive constant.
ATTENTION_TEMPERATURE = 0.01
TOPK_K = 7


# ---------------------------------------------------------------------------
# Kernels (one grid step == a (tv videos) x (tt texts) tile)
# ---------------------------------------------------------------------------
def _avg_kernel(vid_ref, out_ref):
    # vid_ref: (TV, F, D) -> out_ref: (TV, D)   (lane-dense 2-D output)
    v = vid_ref[...].astype(jnp.float32)
    out_ref[...] = jnp.mean(v, axis=1).astype(out_ref.dtype)


def _sims(text, video):
    """sims[v, f, t] = <video[v, f], text[t]> — one MXU matmul.

    The (TV, FP, D) <-> (TV*FP, D) reshapes are relayout-free because FP is
    padded to the sublane pack unit in the wrapper."""
    TV, FP, D = video.shape
    TT = text.shape[0]
    out = lax.dot_general(
        video.reshape(TV * FP, D), text.astype(video.dtype),
        dimension_numbers=(((1,), (1,)), ((), ())),
        preferred_element_type=jnp.float32)
    return out.reshape(TV, FP, TT)


def _pool(weights, video):
    """pooled[v, t, d] = sum_f weights[v, f, t] * video[v, f, d] (batched MXU)."""
    return lax.dot_general(
        weights.astype(video.dtype), video,
        dimension_numbers=(((1,), (1,)), ((0,), (0,))),
        preferred_element_type=jnp.float32)


def _topk_kernel(text_ref, vid_ref, out_ref, *, k, num_frames):
    text = text_ref[...]                        # (TT, D)
    video = vid_ref[...]                        # (TV, FP, D), FP >= num_frames
    TV, FP, _ = video.shape
    TT = text.shape[0]

    sims = _sims(text, video)                   # (TV, FP, TT) f32

    # Order-preserving int32 key of the f32 sims with the frame index packed
    # into the low ceil(log2(FP)) bits: a single integer max per iteration does
    # both the value argmax and the lowest-index tie-break (unique per column).
    nbits = max(1, (FP - 1).bit_length())
    low_mask = (1 << nbits) - 1
    frame_iota = lax.broadcasted_iota(jnp.int32, (TV, FP, TT), 1)

    bits = pltpu.bitcast(sims, jnp.int32)
    key = jnp.where(bits < 0, bits ^ jnp.int32(0x7FFFFFFF), bits)
    key = (key & jnp.int32(~low_mask)) | (jnp.int32(low_mask) - frame_iota)

    neg = jnp.int32(jnp.iinfo(jnp.int32).min)
    if FP != num_frames:                        # padded frames are never picked
        key = jnp.where(frame_iota < num_frames, key, neg)

    mask_acc = jnp.zeros((TV, FP, TT), jnp.float32)
    for _ in range(k):                          # k one-hot selections
        kmax = jnp.max(key, axis=1, keepdims=True)   # single XLU reduce / iter
        onehot = key == kmax                         # exactly one per column
        mask_acc = mask_acc + onehot.astype(jnp.float32)
        key = jnp.where(onehot, neg, key)

    # Single pooling matmul: pooled[v,t,d] = sum_f mask[v,f,t] * video[v,f,d]
    out_ref[...] = _pool(mask_acc, video).astype(out_ref.dtype)


def _attention_kernel(text_ref, vid_ref, out_ref, *, temperature, num_frames):
    text = text_ref[...]                        # (TT, D)
    video = vid_ref[...]                        # (TV, FP, D)
    _, FP, _ = video.shape

    sims = _sims(text, video) / jnp.float32(temperature)
    if FP != num_frames:                        # padded frames get zero weight
        f_col = lax.broadcasted_iota(jnp.int32, sims.shape, 1)
        sims = jnp.where(f_col < num_frames, sims, -jnp.inf)

    m = jnp.max(sims, axis=1, keepdims=True)
    p = jnp.exp(sims - m)
    w = p / jnp.sum(p, axis=1, keepdims=True)   # exact softmax (review feedback)

    out_ref[...] = _pool(w, video).astype(out_ref.dtype)


# ---------------------------------------------------------------------------
# Tiling / VMEM budgeting
# ---------------------------------------------------------------------------
def _vmem_limit_bytes():
    """Generation-aware scoped-VMEM limit: half of physical, capped at 64 MiB.
    v5e/v6e (128 MiB physical) -> 64 MiB; v7x (64 MiB physical) -> 32 MiB."""
    cap = 64 << 20
    try:
        cap = int(getattr(pltpu.get_tpu_info(), "vmem_capacity_bytes", cap))
    except Exception:
        pass
    return int(max(16 << 20, min(cap // 2, 64 << 20)))


def _frame_pack(itemsize):
    # Sublane pack unit: 8 rows for 4-byte, 16 for 2-byte, 32 for 1-byte dtypes.
    return max(8, 32 // int(itemsize))


def _pick_tv_avg(V, F, D, itemsize, budget):
    # Double-buffered in/out blocks + the f32 mean intermediate.
    per_video = 2 * F * D * itemsize + 2 * D * itemsize + (F * D + D) * 4
    tv = max(1, budget // per_video)
    if tv >= V:
        return int(V)
    # (tv, D) output block: second-to-last dim must be a multiple of 8 (or == V).
    return int(min(V, max(8, (tv // 8) * 8)))


def _pick_tiles_pooled(V, T, F_blk, D, itemsize, budget):
    """(tv, tt) such that the FULL working set — double-buffered video/text/out
    blocks plus f32/int32 intermediates (sims, keys/weights, mask, pooled) —
    fits the budget.  Shrinks the text tile first if a single video is too big."""
    def per_video(tt):
        return (2 * F_blk * D * itemsize          # video in (double-buffered)
                + 2 * tt * D * itemsize           # out (double-buffered)
                + (3 * F_blk * tt + tt * D + F_blk * D) * 4)   # f32/i32 temps

    def text_part(tt):
        return 2 * tt * D * itemsize              # resident text block

    tt = T
    while tt > 8 and text_part(tt) + per_video(tt) > budget:
        tt = max(8, ((tt // 2) // 8) * 8)         # keep a sublane multiple
    tv = max(1, (budget - text_part(tt)) // per_video(tt))
    return int(min(tv, V)), int(min(tt, T))


# ---------------------------------------------------------------------------
# Wrappers
# ---------------------------------------------------------------------------
def avg_pooling(text_embeds, video_embeds, tv=None):
    del text_embeds                               # unused, as in the torch module
    V, F, D = video_embeds.shape
    isz = jnp.dtype(video_embeds.dtype).itemsize
    limit = _vmem_limit_bytes()
    if tv is None:
        tv = _pick_tv_avg(V, F, D, isz, budget=limit // 2)
    return pl.pallas_call(
        _avg_kernel,
        out_shape=jax.ShapeDtypeStruct((V, D), video_embeds.dtype),
        grid=(pl.cdiv(V, tv),),
        in_specs=[pl.BlockSpec((tv, F, D), lambda v: (v, 0, 0))],
        out_specs=pl.BlockSpec((tv, D), lambda v: (v, 0)),
        compiler_params=pltpu.CompilerParams(
            # TODO(synk): on v7x verify the "parallel" axis shards across both
            # TensorCores; switch to pltpu.CORE_PARALLEL / pl.core_map if not.
            dimension_semantics=("parallel",),
            vmem_limit_bytes=limit),
        cost_estimate=pl.CostEstimate(
            flops=V * F * D, transcendentals=0,
            bytes_accessed=(V * F * D + V * D) * isz),
    )(video_embeds)


def _run_pooled(kernel, text_embeds, video_padded, V, F_blk, tv, tt, limit,
                transcendentals):
    T, D = text_embeds.shape
    isz = jnp.dtype(video_padded.dtype).itemsize
    nv, nt = pl.cdiv(V, tv), pl.cdiv(T, tt)
    return pl.pallas_call(
        kernel,
        out_shape=jax.ShapeDtypeStruct((V, T, D), video_padded.dtype),
        grid=(nv, nt),                             # text (inner) axis varies
        in_specs=[                                 # fastest -> video block stays
            pl.BlockSpec((tt, D), lambda v, t: (t, 0)),          # text tile
            pl.BlockSpec((tv, F_blk, D), lambda v, t: (v, 0, 0)),  # video tile
        ],
        out_specs=pl.BlockSpec((tv, tt, D), lambda v, t: (v, t, 0)),
        compiler_params=pltpu.CompilerParams(
            # TODO(synk): on v7x verify megacore sharding of the leading axis;
            # use pltpu.CORE_PARALLEL / pl.core_map if the trace shows one core.
            dimension_semantics=("parallel", "parallel"),
            vmem_limit_bytes=limit),
        cost_estimate=pl.CostEstimate(
            flops=4 * V * F_blk * T * D,
            transcendentals=transcendentals,
            bytes_accessed=(nt * V * F_blk * D + nv * T * D + V * T * D) * isz),
    )(text_embeds, video_padded)


def _pad_frames(video_embeds, F_blk):
    V, F, D = video_embeds.shape
    if F_blk == F:
        return video_embeds
    # One-time HBM pad of the frame axis to the sublane pack unit so the
    # in-kernel (tv,F,D)<->(tv*F,D) reshapes never cross (8,128) tile boundaries
    # (review item; padded frames are masked out inside the kernels).
    return jnp.pad(video_embeds, ((0, 0), (0, F_blk - F), (0, 0)))


def topk_pooling(text_embeds, video_embeds, k=TOPK_K, tv=None, tt=None):
    T, D = text_embeds.shape
    V, F, _ = video_embeds.shape
    if not 0 < k <= F:
        raise ValueError(f"top-k needs 0 < k <= num_frames (k={k}, F={F})")
    isz = jnp.dtype(video_embeds.dtype).itemsize
    pack = _frame_pack(isz)
    F_blk = ((F + pack - 1) // pack) * pack
    limit = _vmem_limit_bytes()
    auto_tv, auto_tt = _pick_tiles_pooled(V, T, F_blk, D, isz, budget=limit // 2)
    tv = auto_tv if tv is None else tv
    tt = auto_tt if tt is None else tt
    kernel = functools.partial(_topk_kernel, k=k, num_frames=F)
    return _run_pooled(kernel, text_embeds, _pad_frames(video_embeds, F_blk),
                       V, F_blk, tv, tt, limit, transcendentals=0)


def attention_pooling(text_embeds, video_embeds,
                      temperature=ATTENTION_TEMPERATURE, tv=None, tt=None):
    T, D = text_embeds.shape
    V, F, _ = video_embeds.shape
    isz = jnp.dtype(video_embeds.dtype).itemsize
    pack = _frame_pack(isz)
    F_blk = ((F + pack - 1) // pack) * pack
    limit = _vmem_limit_bytes()
    auto_tv, auto_tt = _pick_tiles_pooled(V, T, F_blk, D, isz, budget=limit // 2)
    tv = auto_tv if tv is None else tv
    tt = auto_tt if tt is None else tt
    kernel = functools.partial(_attention_kernel, temperature=temperature,
                               num_frames=F)
    return _run_pooled(kernel, text_embeds, _pad_frames(video_embeds, F_blk),
                       V, F_blk, tv, tt, limit, transcendentals=V * F * T)


def baseline_pooling(pooling_type, text_embeds, video_embeds):
    if pooling_type == "avg":
        return avg_pooling(text_embeds, video_embeds)
    elif pooling_type == "topk":
        return topk_pooling(text_embeds, video_embeds)
    elif pooling_type == "attention":
        return attention_pooling(text_embeds, video_embeds)
    raise NotImplementedError(pooling_type)


# ---------------------------------------------------------------------------
# Pure-JAX references (semantics of the torch module)
# ---------------------------------------------------------------------------
def _ref_avg(text_embeds, video_embeds):
    return video_embeds.mean(axis=1)


def _ref_topk(text_embeds, video_embeds, k=TOPK_K):
    sims = jnp.einsum("vfd,td->vtf", video_embeds, text_embeds)     # (V,T,F)
    _, idx = lax.top_k(sims, k)                                     # (V,T,k)
    gathered = jnp.take_along_axis(
        video_embeds[:, None, :, :], idx[..., None], axis=2)        # (V,T,k,D)
    return gathered.sum(axis=2)                                     # (V,T,D)


def _ref_attention(text_embeds, video_embeds, temperature=ATTENTION_TEMPERATURE):
    sims = jnp.einsum("vfd,td->vft", video_embeds, text_embeds)     # (V,F,T)
    w = jax.nn.softmax(sims / temperature, axis=1)
    return jnp.einsum("vft,vfd->vtd", w, video_embeds)              # (V,T,D)


# ---------------------------------------------------------------------------
if __name__ == "__main__":
    key = jax.random.PRNGKey(0)
    k_text, k_vid = jax.random.split(key)

    # Config 1: small aligned shapes, single block per kernel (tv == V, tt == T).
    T1, V1, F1, D1 = 4, 2, 8, 32
    text1 = jax.random.normal(k_text, (T1, D1), dtype=jnp.float32)
    video1 = jax.random.normal(k_vid, (V1, F1, D1), dtype=jnp.float32)

    out_avg = jax.block_until_ready(baseline_pooling("avg", text1, video1))
    out_topk = jax.block_until_ready(baseline_pooling("topk", text1, video1))
    out_attn = jax.block_until_ready(baseline_pooling("attention", text1, video1))

    assert out_avg.shape == (V1, D1)
    assert out_topk.shape == (V1, T1, D1)
    assert out_attn.shape == (V1, T1, D1)
    assert jnp.allclose(out_avg, _ref_avg(text1, video1), atol=1e-5, rtol=1e-5)
    assert jnp.allclose(out_topk, _ref_topk(text1, video1), atol=1e-4, rtol=1e-4)
    assert jnp.allclose(out_attn, _ref_attention(text1, video1),
                        atol=2e-3, rtol=2e-3)

    # Config 2: ragged grid on both axes (V=10 with tv=4/8, T=12 with tt=8) and
    # a frame count (F=12) that exercises the padded-frame masking path (F_blk=16).
    k_t2, k_v2 = jax.random.split(jax.random.PRNGKey(1))
    T2, V2, F2, D2 = 12, 10, 12, 32
    text2 = jax.random.normal(k_t2, (T2, D2), dtype=jnp.float32)
    video2 = jax.random.normal(k_v2, (V2, F2, D2), dtype=jnp.float32)

    out_avg2 = jax.block_until_ready(avg_pooling(text2, video2, tv=8))
    out_topk2 = jax.block_until_ready(topk_pooling(text2, video2, tv=4, tt=8))
    out_attn2 = jax.block_until_ready(attention_pooling(text2, video2, tv=4, tt=8))

    assert out_avg2.shape == (V2, D2)
    assert out_topk2.shape == (V2, T2, D2)
    assert out_attn2.shape == (V2, T2, D2)
    assert jnp.allclose(out_avg2, _ref_avg(text2, video2), atol=1e-5, rtol=1e-5)
    assert jnp.allclose(out_topk2, _ref_topk(text2, video2), atol=1e-4, rtol=1e-4)
    assert jnp.allclose(out_attn2, _ref_attention(text2, video2),
                        atol=2e-3, rtol=2e-3)

    print("KERNEL_OK")
</pallas_src>

<mosaic_0001>
module attributes {stable_mosaic.version = 11 : i64} {
  func.func @_avg_kernel(%arg0: i32, %arg1: memref<2x8x32xf32, #tpu.memory_space<vmem>>, %arg2: memref<2x32xf32, #tpu.memory_space<vmem>>) attributes {dimension_semantics = [#tpu.dimension_semantics<parallel>], iteration_bounds = array<i64: 1>, scalar_prefetch = 0 : i64, scratch_operands = 0 : i64, tpu.core_type = #tpu.core_type<tc>, window_params = [{transform_indices = @transform_0, window_bounds = array<i64: 2, 8, 32>}, {transform_indices = @transform_1, window_bounds = array<i64: 2, 32>}]} {
    %c0 = arith.constant 0 : index
    %c0_0 = arith.constant 0 : index
    %c0_1 = arith.constant 0 : index
    %0 = vector.load %arg1[%c0, %c0_0, %c0_1] : memref<2x8x32xf32, #tpu.memory_space<vmem>>, vector<2x8x32xf32>
    %cst = arith.constant dense<0.000000e+00> : vector<2x32xf32>
    %1 = vector.multi_reduction <add>, %0, %cst [1] : vector<2x8x32xf32> to vector<2x32xf32>
    %cst_2 = arith.constant 8.000000e+00 : f32
    %2 = vector.broadcast %cst_2 : f32 to vector<2x32xf32>
    %3 = arith.divf %1, %2 : vector<2x32xf32>
    %c0_3 = arith.constant 0 : index
    %c0_4 = arith.constant 0 : index
    %4 = vector.load %arg2[%c0_3, %c0_4] : memref<2x32xf32, #tpu.memory_space<vmem>>, vector<2x32xf32>
    tpu.vector_store %arg2[%c0_3, %c0_4], %3 {strides = array<i32>} : memref<2x32xf32, #tpu.memory_space<vmem>>, vector<2x32xf32>,
    return
  }
  func.func @transform_0(%arg0: i32) -> (i32, i32, i32) {
    %c0_i32 = arith.constant 0 : i32
    %c0_i32_0 = arith.constant 0 : i32
    %c0_i32_1 = arith.constant 0 : i32
    return %arg0, %c0_i32, %c0_i32_0 : i32, i32, i32
  }
  func.func @transform_1(%arg0: i32) -> (i32, i32) {
    %c0_i32 = arith.constant 0 : i32
    %c0_i32_0 = arith.constant 0 : i32
    return %arg0, %c0_i32 : i32, i32
  }
}

</mosaic_0001>

<bundles_post_ra>
// kernel: tpu_custom_call.1
= control target key start
LH: loop header
LB: loop body
LE: loop exit
PB: predicated region body
PF: predicated region fallthrough
CT: control target
= control target key end

     0   :  { %6 = vsyncpa [#allocation3], 0  ;;  %s155_s0 = inlined_call_operand.hbm [shape: f32[2,8,32], index: 0, kind: input, shape index: {}]   ;;  %s156_s1 = inlined_call_operand.hbm [shape: f32[2,32], index: 1, kind: output, shape index: {}]  }
   0x1   :  { %7 = vsyncpa [#allocation4], 0  ;;  %s117_s6 = smov [#allocation2]   ;;  %s69_s10 = scalar_lea.hbm %s155_s0, 256 }
   0x2   :  { %s13_s7 = sshll.u32 %s117_s6, 4  ;;  %p70_p0 = scmp.ne.s32.totalorder %s155_s0, %s69_s10  ;;  %s14_s7 = int_to_ptr.vmem [resolvable:$true] %s13_s7 }
   0x3   :  { %p73_p1 = scmp.lt.u32.totalorder %s69_s10, %s155_s0 }
   0x5   :  { %p75_p2 = pnand %p73_p1, %p70_p0 }
   0x7   :  { %78 = shalt.err (!%p75_p2)
}
   0x8   :  { %s79_s15 = scalar_lea.vmem %s14_s7, 256  ;;  %p84_p4 = scmp.lt.s32.totalorder %s14_s7, %s14_s7 }
   0x9   :  { %p80_p3 = scmp.ne.s32.totalorder %s14_s7, %s79_s15  ;;  %p85_p5 = scmp.lt.s32.totalorder %s79_s15, %s79_s15 }
   0xb   :  { %p86_p6 = por %p85_p5, %p84_p4 }
   0xd   :  { %p87_p7 = pnand %p86_p6, %p80_p3 }
   0xf   :  { %90 = shalt.err (!%p87_p7)
}
  0x10   :  { %s118_s16 = smov 128   ;;  %s119_s17 = smov 8  }
  0x11   :  { %19 = dma.hbm_to_vmem [thread:$0]  %s155_s0, 256, %s14_s7, [#allocation3], %s118_s16, %s118_s16, %s119_s17  }
  0x12   :  { %113 = dma.done.wait [#allocation3], 256  }
  0x13   :  { %114 = vsyncadd [#allocation3], 4294967040  ;;  %vm25_vm0 = vcmask 261120   ;;  %v23_v0 = vld [vmem:[#allocation2] sm:$0xff]  ;;  %v24_v1 = vld [vmem:[#allocation2 + $0x8] sm:$0xff]  ;;  %s120_s0 = smov [#allocation5]  }
  0x14   :  { %v26_v2 = vsel %vm25_vm0, %v23_v0, 0.0  ;;  %v33_v3 = vsel %vm25_vm0, %v24_v1, 0.0  ;;  %s56_s20 = sshll.u32 %s120_s0, 4  ;;  %vm45_vm1 = vcmask 1041409   ;;  %vm48_vm2 = vcmask 254976   ;;  %s57_s20 = int_to_ptr.vmem [resolvable:$true] %s56_s20 }
  0x15   :  { %v27_v4 = vrot.slane %v26_v2, 4  ;;  %v34_v5 = vrot.slane %v33_v3, 4  ;;  %s91_s21 = scalar_lea.vmem %s57_s20, 32  ;;  %p96_p9 = scmp.lt.s32.totalorder %s57_s20, %s57_s20 }
  0x16   :  { %p92_p8 = scmp.ne.s32.totalorder %s57_s20, %s91_s21  ;;  %p97_p10 = scmp.lt.s32.totalorder %s91_s21, %s91_s21 }
  0x17   :  { %v28_v6 = vadd.f32 %v27_v4, %v26_v2  ;;  %v35_v7 = vadd.f32 %v34_v5, %v33_v3 }
  0x18   :  { %p98_p11 = por %p97_p10, %p96_p9 }
  0x19   :  { %v29_v8 = vrot.slane %v28_v6, 2  ;;  %v36_v9 = vrot.slane %v35_v7, 2 }
  0x1a   :  { %p99_p12 = pnand %p98_p11, %p92_p8 }
  0x1b   :  { %v30_v10 = vadd.f32 %v29_v8, %v28_v6  ;;  %v37_v11 = vadd.f32 %v36_v9, %v35_v7 }
  0x1d   :  { %v31_v12 = vrot.slane %v30_v10, 1  ;;  %v38_v13 = vrot.slane %v37_v11, 1 }
  0x1f   :  { %v32_v14 = vadd.f32 %v31_v12, %v30_v10  ;;  %v39_v15 = vadd.f32 %v38_v13, %v37_v11 }
  0x21   :  { %v41_v16 = vmul.f32 0.125, %v32_v14  ;;  %v42_v17 = vmul.f32 0.125, %v39_v15 }
  0x23   :  { %v46_v18 = vsel %vm45_vm1, %v42_v17, %v41_v16 }
  0x24   :  { %49 = vst.msk [vmem:[#allocation5] sm:$0x3] %vm48_vm2, %v46_v18 }
  0x25   :  { %102 = shalt.err (!%p99_p12)
}
  0x26   :  { %s103_s24 = scalar_lea.hbm %s156_s1, 32 }
  0x27   :  { %p104_p13 = scmp.ne.s32.totalorder %s156_s1, %s103_s24  ;;  %p107_p0 = scmp.lt.u32.totalorder %s103_s24, %s156_s1 }
  0x29   :  { %p109_p1 = pnand %p107_p0, %p104_p13 }
  0x2b   :  { %112 = shalt.err (!%p109_p1)
}
  0x2c   :  { %59 = dma.vmem_to_hbm [thread:$0]  %s57_s20, 32, %s156_s1, [#allocation4]  }
  0x2d   :  { %115 = dma.done.wait [#allocation4], 32  }
  0x2e   :  { %116 = vsyncadd [#allocation4], 4294967264 }
  0x2f   :  { %63 = vsyncpa [#allocation3], 1 }
  0x30   :  { %64 = vsyncpa [#allocation4], 1 }

</bundles_post_ra>
